<compile_context>
chip_gen: v6e
topology: v6e:2x2x1
jax: 0.10.0
libtpu: 0.0.40
codegen_flags: <defaults>
</compile_context>

<pallas_src>
import functools
import numpy as np
import jax
import jax.numpy as jnp
from jax.experimental import pallas as pl
from jax.experimental.pallas import tpu as pltpu


# ---------------------------------------------------------------------------
# helpers
# ---------------------------------------------------------------------------

def bn_fold(gamma, beta, rmean, rvar, eps=1e-5):
    scale = gamma / jnp.sqrt(rvar + eps)
    shift = beta - rmean * scale
    return scale, shift


def _bcast_spec(shape):
    nd = len(shape)
    return pl.BlockSpec(shape, lambda i: (0,) * nd)


def _choose_tile(n, max_tile):
    t = min(max_tile, ((n + 7) // 8) * 8)
    return max(8, (t // 8) * 8)


def _pad_rows(a, n_pad):
    n = a.shape[0]
    if n_pad == n:
        return a
    pad = [(0, n_pad - n)] + [(0, 0)] * (a.ndim - 1)
    return jnp.pad(a, pad)


def knn_within_batch(p, o, nsample):
    # TODO(synk): boundaryops.boundaryquery (boundary/edge-constrained neighbor search,
    # custom CUDA op) has no Pallas equivalent; replaced with plain per-batch KNN to
    # produce the grouping indices (glue, not the hot path).
    # TODO(synk): the dense n x n distance matrix is O(n^2); swap for a tiled / grid-hash
    # KNN for production-sized point clouds (it would dominate wall clock before the
    # Pallas kernels do).
    n = p.shape[0]
    batch_id = jnp.searchsorted(o, jnp.arange(n), side="right")
    d2 = jnp.sum((p[:, None, :] - p[None, :, :]) ** 2, axis=-1)
    d2 = jnp.where(batch_id[:, None] == batch_id[None, :], d2, jnp.float32(1e30))
    _, idx = jax.lax.top_k(-d2, nsample)
    idx = idx.astype(jnp.int32)
    valid = batch_id[idx] == batch_id[:, None]
    idx = jnp.where(valid, idx, jnp.arange(n, dtype=jnp.int32)[:, None])
    return idx


# ---------------------------------------------------------------------------
# Pallas kernel A: fused linear1(+bn1)+ReLU  ->  concatenated q/k/v projection
# ---------------------------------------------------------------------------

def _qkv_kernel(x_ref, w1_ref, t1_ref, wqkv_ref, bqkv_ref, o_ref):
    x1 = jnp.dot(x_ref[...], w1_ref[...], preferred_element_type=jnp.float32) + t1_ref[...]
    x1 = jnp.maximum(x1, 0.0)
    qkv = jnp.dot(x1, wqkv_ref[...], preferred_element_type=jnp.float32) + bqkv_ref[...]
    o_ref[...] = qkv.astype(o_ref.dtype)


def fused_qkv(x, w1f, t1, wqkv, bqkv, max_tile=512):
    n, cin = x.shape
    ch = w1f.shape[1]
    c3 = wqkv.shape[1]
    tile = _choose_tile(n, max_tile)
    n_pad = -(-n // tile) * tile
    x_p = _pad_rows(x, n_pad)
    grid = (n_pad // tile,)
    out = pl.pallas_call(
        _qkv_kernel,
        out_shape=jax.ShapeDtypeStruct((n_pad, c3), jnp.float32),
        grid=grid,
        in_specs=[
            pl.BlockSpec((tile, cin), lambda i: (i, 0)),
            pl.BlockSpec((cin, ch), lambda i: (0, 0)),
            pl.BlockSpec((1, ch), lambda i: (0, 0)),
            pl.BlockSpec((ch, c3), lambda i: (0, 0)),
            pl.BlockSpec((1, c3), lambda i: (0, 0)),
        ],
        out_specs=pl.BlockSpec((tile, c3), lambda i: (i, 0)),
        compiler_params=pltpu.CompilerParams(dimension_semantics=("parallel",)),
    )(x_p, w1f, t1.reshape(1, -1), wqkv, bqkv.reshape(1, -1))
    return out[:n]


# ---------------------------------------------------------------------------
# Pallas kernel B: attention core + bn2+ReLU + linear3(+bn3) + residual + ReLU
# Fully lane-dense: all per-neighbor linears / broadcasts / neighbor reductions run as
# MXU matmuls with host-built block-diagonal / summation / broadcast matrices.
# ---------------------------------------------------------------------------

def _attn_kernel(pr_ref, xk_ref, xv_ref, xq_ref, id_ref,
                 wp1_ref, wp2_ref, ww1_ref, ww2_ref, smat_ref, bmat_ref, w3_ref, vec_ref,
                 o_ref, *, ns, c, cs):
    f32 = jnp.float32

    # --- linear_p (bn_p folded): per-neighbor 3->3 ReLU 3->c as block-diag matmuls ---
    bp1 = vec_ref[0:1, :ns * 3]                                    # (1, ns*3)
    h = jnp.dot(pr_ref[...], wp1_ref[...], preferred_element_type=f32) + bp1
    h = jnp.maximum(h, 0.0)                                        # (tile, ns*3)
    bp2 = vec_ref[1:2, :]                                          # (1, ns*c)
    pr_c = jnp.dot(h, wp2_ref[...], preferred_element_type=f32) + bp2   # (tile, ns*c)

    # --- w-branch: xk*sw0 - xq*sw0 + (p_r*sw0 + tw0) -> ReLU -> Lin(+bn_w1) -> ReLU -> Lin
    # (sw0 already folded into wq/wk upstream; q broadcast over neighbors via MXU) ---
    sw0 = vec_ref[2:3, :]
    tw0 = vec_ref[3:4, :]
    xq_rep = jnp.dot(xq_ref[...], bmat_ref[...], preferred_element_type=f32)  # (tile, ns*c)
    w0 = jnp.maximum(xk_ref[...] - xq_rep + pr_c * sw0 + tw0, 0.0)

    bw1 = vec_ref[4:5, :ns * cs]                                   # (1, ns*cs)
    wl = jnp.dot(w0, ww1_ref[...], preferred_element_type=f32) + bw1
    wl = jnp.maximum(wl, 0.0)                                      # (tile, ns*cs)
    bw2 = vec_ref[5:6, :]
    logits = jnp.dot(wl, ww2_ref[...], preferred_element_type=f32) + bw2     # (tile, ns*c)

    # --- softmax over the neighbor axis (per channel); a per-row shift is a valid
    #     stabilizer and keeps the reduction a cheap full-lane max ---
    m = jnp.max(logits, axis=-1, keepdims=True)
    e = jnp.exp(logits - m)
    denom_c = jnp.dot(e, smat_ref[...], preferred_element_type=f32)          # (tile, c)
    denom = jnp.dot(denom_c, bmat_ref[...], preferred_element_type=f32)      # (tile, ns*c)
    w = e * pl.reciprocal(denom + 1e-30, approx=True)

    # --- weighted value sum over neighbors (MXU summation matrix) ---
    y = jnp.dot((xv_ref[...] + pr_c) * w, smat_ref[...], preferred_element_type=f32)  # (tile, c)

    # --- fused epilogue: bn2 affine + ReLU, linear3(+bn3 folded), residual, ReLU ---
    s2 = vec_ref[6:7, :c]
    t2 = vec_ref[7:8, :c]
    t3 = vec_ref[8:9, :c]
    yb = jnp.maximum(y * s2 + t2, 0.0)
    z = jnp.dot(yb, w3_ref[...], preferred_element_type=f32) + t3 + id_ref[...]
    o_ref[...] = jnp.maximum(z, 0.0).astype(o_ref.dtype)


def boundary_attention_block(pr2, xk2, xv2, xq, identity, params, sw0, tw0,
                             share_planes, nsample, max_tile=256):
    n, c = xq.shape
    ns = nsample
    cs = c // share_planes
    tile = _choose_tile(n, max_tile)
    n_pad = -(-n // tile) * tile
    pr_p, xk_p, xv_p, xq_p, id_p = [_pad_rows(a, n_pad)
                                    for a in (pr2, xk2, xv2, xq, identity)]

    # --- host-side BN folds ---
    sp, tp = bn_fold(*params["bn_p"])
    wp1f = params["wp1"] * sp[None, :]
    bp1f = params["bp1"] * sp + tp
    sw1, tw1 = bn_fold(*params["bn_w1"])
    ww1f = params["ww1"] * sw1[None, :]
    bw1f = params["bw1"] * sw1 + tw1
    s2, t2 = bn_fold(*params["bn2"])
    s3, t3 = bn_fold(*params["bn3"])
    w3f = params["w3"] * s3[None, :]

    # share_planes repeat folded into the last w-branch linear (channel j uses col j % cs)
    ww2_rep = jnp.tile(params["ww2"], (1, share_planes))            # (cs, c)
    bw2_rep = jnp.tile(params["bw2"], share_planes)                 # (c,)

    # --- block-diag per-neighbor weights + neighbor sum / broadcast matrices ---
    eye_ns = jnp.eye(ns, dtype=jnp.float32)
    wp1_bd = jnp.kron(eye_ns, wp1f)                                 # (ns*3, ns*3)
    wp2_bd = jnp.kron(eye_ns, params["wp2"])                        # (ns*3, ns*c)
    ww1_bd = jnp.kron(eye_ns, ww1f)                                 # (ns*c, ns*cs)
    ww2_bd = jnp.kron(eye_ns, ww2_rep)                              # (ns*cs, ns*c)
    smat = jnp.kron(jnp.ones((ns, 1), jnp.float32),
                    jnp.eye(c, dtype=jnp.float32))                  # (ns*c, c): sum over s
    bmat = smat.T                                                   # (c, ns*c): bcast over s

    # --- pack all small broadcast affines into one (9, ns*c) constant ---
    width = ns * c

    def row(v):
        return jnp.zeros((width,), jnp.float32).at[:v.shape[0]].set(v)

    vec = jnp.stack([
        row(jnp.tile(bp1f, ns)),        # 0: bp1 (bn_p folded), per neighbor
        row(jnp.tile(params["bp2"], ns)),  # 1: bp2, per neighbor
        row(jnp.tile(sw0, ns)),         # 2: bn_w0 scale (for p_r term)
        row(jnp.tile(tw0, ns)),         # 3: bn_w0 shift
        row(jnp.tile(bw1f, ns)),        # 4: bw1 (bn_w1 folded)
        row(jnp.tile(bw2_rep, ns)),     # 5: bw2 (repeat-folded)
        row(s2), row(t2), row(t3),      # 6,7,8: bn2 scale/shift, bn3 shift
    ], axis=0)

    grid = (n_pad // tile,)
    din = lambda w: pl.BlockSpec((tile, w), lambda i: (i, 0))
    in_specs = [
        din(ns * 3), din(ns * c), din(ns * c), din(c), din(c),
        _bcast_spec(wp1_bd.shape), _bcast_spec(wp2_bd.shape),
        _bcast_spec(ww1_bd.shape), _bcast_spec(ww2_bd.shape),
        _bcast_spec(smat.shape), _bcast_spec(bmat.shape),
        _bcast_spec(w3f.shape), _bcast_spec(vec.shape),
    ]
    out = pl.pallas_call(
        functools.partial(_attn_kernel, ns=ns, c=c, cs=cs),
        out_shape=jax.ShapeDtypeStruct((n_pad, c), jnp.float32),
        grid=grid,
        in_specs=in_specs,
        out_specs=pl.BlockSpec((tile, c), lambda i: (i, 0)),
        compiler_params=pltpu.CompilerParams(
            dimension_semantics=("parallel",),
            vmem_limit_bytes=48 * 1024 * 1024),   # explicit budget: headroom on v7x 64 MiB
    )(pr_p, xk_p, xv_p, xq_p, id_p,
      wp1_bd, wp2_bd, ww1_bd, ww2_bd, smat, bmat, w3f, vec)
    return out[:n]


# ---------------------------------------------------------------------------
# BoundaryTransformerBlock forward (two pallas_calls total)
# ---------------------------------------------------------------------------

def boundary_transformer_block(p, x, o, params, share_planes, nsample,
                               qkv_tile=512, attn_tile=256):
    identity = x
    n = x.shape[0]
    c = params["w1"].shape[1]

    # fold bn1 into linear1, bn_w0 scale into the q/k projections; concat q/k/v weights
    s1, t1 = bn_fold(*params["bn1"])
    sw0, tw0 = bn_fold(*params["bn_w0"])
    w1f = params["w1"] * s1[None, :]
    wqkv = jnp.concatenate([params["wq"] * sw0[None, :],
                            params["wk"] * sw0[None, :],
                            params["wv"]], axis=1)
    bqkv = jnp.concatenate([params["bq"] * sw0,
                            params["bk"] * sw0,
                            params["bv"]], axis=0)

    qkv = fused_qkv(x, w1f, t1, wqkv, bqkv, max_tile=qkv_tile)
    xq_s, xk_s, xv = qkv[:, :c], qkv[:, c:2 * c], qkv[:, 2 * c:]

    # boundary_queryandgroup (gather glue in plain JAX); gathered streams are flattened
    # host-side to lane-dense (n, nsample*c) so kernel B sees unpadded 2-D blocks.
    # TODO(synk): move the neighbor gather into kernel B via scalar-prefetched idx +
    # in-kernel row DMA (and optionally bf16 q/k/v) to cut the n*nsample*c HBM round-trip.
    idx = knn_within_batch(p, o, nsample)
    pr2 = (p[idx] - p[:, None, :]).reshape(n, nsample * 3)   # (n, ns*3)
    xk2 = xk_s[idx].reshape(n, nsample * c)                   # (n, ns*c), bn_w0-scaled
    xv2 = xv[idx].reshape(n, nsample * c)                     # (n, ns*c)

    out = boundary_attention_block(pr2, xk2, xv2, xq_s, identity, params, sw0, tw0,
                                   share_planes, nsample, max_tile=attn_tile)
    return p, out, o


# ---------------------------------------------------------------------------
# deterministic parameter init
# ---------------------------------------------------------------------------

def init_params(key, in_planes, planes, share_planes):
    mid = planes
    cs = planes // share_planes
    keys = list(jax.random.split(key, 48))
    it = iter(keys)

    def lin_w(cin, cout):
        return jax.random.normal(next(it), (cin, cout), jnp.float32) / np.sqrt(cin)

    def lin_b(cout):
        return 0.1 * jax.random.normal(next(it), (cout,), jnp.float32)

    def bn(c):
        gamma = 1.0 + 0.1 * jax.random.normal(next(it), (c,), jnp.float32)
        beta = 0.1 * jax.random.normal(next(it), (c,), jnp.float32)
        rmean = 0.1 * jax.random.normal(next(it), (c,), jnp.float32)
        rvar = 0.5 + jax.random.uniform(next(it), (c,), jnp.float32)
        return (gamma, beta, rmean, rvar)

    return dict(
        w1=lin_w(in_planes, planes), bn1=bn(planes),
        wq=lin_w(planes, mid), bq=lin_b(mid),
        wk=lin_w(planes, mid), bk=lin_b(mid),
        wv=lin_w(planes, planes), bv=lin_b(planes),
        wp1=lin_w(3, 3), bp1=lin_b(3), bn_p=bn(3),
        wp2=lin_w(3, planes), bp2=lin_b(planes),
        bn_w0=bn(mid),
        ww1=lin_w(mid, cs), bw1=lin_b(cs),
        bn_w1=bn(cs),
        ww2=lin_w(cs, cs), bw2=lin_b(cs),
        bn2=bn(planes),
        w3=lin_w(planes, planes), bn3=bn(planes),
    )


# ---------------------------------------------------------------------------
# pure-JAX reference (mirrors the PyTorch forward, eval-mode BN)
# ---------------------------------------------------------------------------

def reference_block(p, x, o, params, share_planes, nsample):
    relu = lambda v: jnp.maximum(v, 0.0)

    def bn_apply(v, bnp):
        s, t = bn_fold(*bnp)
        return v * s + t

    identity = x
    x1 = relu(bn_apply(x @ params["w1"], params["bn1"]))
    xq = x1 @ params["wq"] + params["bq"]
    xk = x1 @ params["wk"] + params["bk"]
    xv = x1 @ params["wv"] + params["bv"]
    idx = knn_within_batch(p, o, nsample)
    p_r = p[idx] - p[:, None, :]
    xk_g = xk[idx]
    xv_g = xv[idx]
    h = relu(bn_apply(p_r @ params["wp1"] + params["bp1"], params["bn_p"]))
    p_r = h @ params["wp2"] + params["bp2"]
    w = xk_g - xq[:, None, :] + p_r
    w = relu(bn_apply(w, params["bn_w0"]))
    w = w @ params["ww1"] + params["bw1"]
    w = relu(bn_apply(w, params["bn_w1"]))
    w = w @ params["ww2"] + params["bw2"]
    w = jax.nn.softmax(w, axis=1)
    n_, ns_, c_ = xv_g.shape
    s = share_planes
    y = ((xv_g + p_r).reshape(n_, ns_, s, c_ // s) * w[:, :, None, :]).sum(1).reshape(n_, c_)
    y = relu(bn_apply(y, params["bn2"]))
    out = relu(bn_apply(y @ params["w3"], params["bn3"]) + identity)
    return out


# ---------------------------------------------------------------------------

if __name__ == "__main__":
    n, in_planes, planes = 200, 32, 32          # n NOT a multiple of the tile: tests padding
    share_planes, nsample = 8, 16

    key = jax.random.PRNGKey(0)
    k1, k2, kp = jax.random.split(key, 3)
    p = jax.random.uniform(k1, (n, 3), jnp.float32)
    x = jax.random.normal(k2, (n, in_planes), jnp.float32)
    o = jnp.array([100, 200], dtype=jnp.int32)  # two batches of 100 points each

    params = init_params(kp, in_planes, planes, share_planes)

    out_p, out_x, out_o = boundary_transformer_block(p, x, o, params,
                                                     share_planes, nsample)
    out_x = jax.block_until_ready(out_x)

    assert out_x.shape == (n, planes)
    ref = reference_block(p, x, o, params, share_planes, nsample)
    np.testing.assert_allclose(np.asarray(out_x), np.asarray(ref), rtol=2e-2, atol=2e-2)
    print("KERNEL_OK")
</pallas_src>

<mosaic_0001>
module attributes {stable_mosaic.version = 11 : i64} {
  func.func @_qkv_kernel(%arg0: i32, %arg1: memref<200x32xf32, #tpu.memory_space<vmem>>, %arg2: memref<32x32xf32, #tpu.memory_space<vmem>>, %arg3: memref<1x32xf32, #tpu.memory_space<vmem>>, %arg4: memref<32x96xf32, #tpu.memory_space<vmem>>, %arg5: memref<1x96xf32, #tpu.memory_space<vmem>>, %arg6: memref<200x96xf32, #tpu.memory_space<vmem>>) attributes {dimension_semantics = [#tpu.dimension_semantics<parallel>], iteration_bounds = array<i64: 1>, scalar_prefetch = 0 : i64, scratch_operands = 0 : i64, tpu.core_type = #tpu.core_type<tc>, window_params = [{transform_indices = @transform_0, window_bounds = array<i64: 200, 32>}, {pipeline_mode = #tpu.pipeline_mode<synchronous>, transform_indices = @transform_1, window_bounds = array<i64: 32, 32>}, {pipeline_mode = #tpu.pipeline_mode<synchronous>, transform_indices = @transform_2, window_bounds = array<i64: 1, 32>}, {pipeline_mode = #tpu.pipeline_mode<synchronous>, transform_indices = @transform_3, window_bounds = array<i64: 32, 96>}, {pipeline_mode = #tpu.pipeline_mode<synchronous>, transform_indices = @transform_4, window_bounds = array<i64: 1, 96>}, {transform_indices = @transform_5, window_bounds = array<i64: 200, 96>}]} {
    %c0 = arith.constant 0 : index
    %c0_0 = arith.constant 0 : index
    %0 = vector.load %arg1[%c0, %c0_0] : memref<200x32xf32, #tpu.memory_space<vmem>>, vector<200x32xf32>
    %c0_1 = arith.constant 0 : index
    %c0_2 = arith.constant 0 : index
    %1 = vector.load %arg2[%c0_1, %c0_2] : memref<32x32xf32, #tpu.memory_space<vmem>>, vector<32x32xf32>
    %cst = arith.constant dense<0.000000e+00> : vector<200x32xf32>
    %2 = tpu.matmul %0, %1, %cst {dimension_numbers = #tpu.dot_dimension_numbers<[1], [0], [0], [1], [0, 0, 1, 1], [], []>} : vector<200x32xf32>, vector<32x32xf32>, vector<200x32xf32> -> vector<200x32xf32>
    %c0_3 = arith.constant 0 : index
    %c0_4 = arith.constant 0 : index
    %3 = vector.load %arg3[%c0_3, %c0_4] : memref<1x32xf32, #tpu.memory_space<vmem>>, vector<1x32xf32>
    %4 = vector.broadcast %3 : vector<1x32xf32> to vector<200x32xf32>
    %5 = arith.addf %2, %4 : vector<200x32xf32>
    %cst_5 = arith.constant 0.000000e+00 : f32
    %6 = vector.broadcast %cst_5 : f32 to vector<200x32xf32>
    %7 = arith.maximumf %5, %6 : vector<200x32xf32>
    %c0_6 = arith.constant 0 : index
    %c0_7 = arith.constant 0 : index
    %8 = vector.load %arg4[%c0_6, %c0_7] : memref<32x96xf32, #tpu.memory_space<vmem>>, vector<32x96xf32>
    %cst_8 = arith.constant dense<0.000000e+00> : vector<200x96xf32>
    %9 = tpu.matmul %7, %8, %cst_8 {dimension_numbers = #tpu.dot_dimension_numbers<[1], [0], [0], [1], [0, 0, 1, 1], [], []>} : vector<200x32xf32>, vector<32x96xf32>, vector<200x96xf32> -> vector<200x96xf32>
    %c0_9 = arith.constant 0 : index
    %c0_10 = arith.constant 0 : index
    %10 = vector.load %arg5[%c0_9, %c0_10] : memref<1x96xf32, #tpu.memory_space<vmem>>, vector<1x96xf32>
    %11 = vector.broadcast %10 : vector<1x96xf32> to vector<200x96xf32>
    %12 = arith.addf %9, %11 : vector<200x96xf32>
    %c0_11 = arith.constant 0 : index
    %c0_12 = arith.constant 0 : index
    %13 = vector.load %arg6[%c0_11, %c0_12] : memref<200x96xf32, #tpu.memory_space<vmem>>, vector<200x96xf32>
    tpu.vector_store %arg6[%c0_11, %c0_12], %12 {strides = array<i32>} : memref<200x96xf32, #tpu.memory_space<vmem>>, vector<200x96xf32>,
    return
  }
  func.func @transform_0(%arg0: i32) -> (i32, i32) {
    %c0_i32 = arith.constant 0 : i32
    %c0_i32_0 = arith.constant 0 : i32
    return %arg0, %c0_i32 : i32, i32
  }
  func.func @transform_1(%arg0: i32) -> (i32, i32) {
    %c0_i32 = arith.constant 0 : i32
    %c0_i32_0 = arith.constant 0 : i32
    %c0_i32_1 = arith.constant 0 : i32
    return %c0_i32, %c0_i32_0 : i32, i32
  }
  func.func @transform_2(%arg0: i32) -> (i32, i32) {
    %c0_i32 = arith.constant 0 : i32
    %c0_i32_0 = arith.constant 0 : i32
    %c0_i32_1 = arith.constant 0 : i32
    return %c0_i32, %c0_i32_0 : i32, i32
  }
  func.func @transform_3(%arg0: i32) -> (i32, i32) {
    %c0_i32 = arith.constant 0 : i32
    %c0_i32_0 = arith.constant 0 : i32
    %c0_i32_1 = arith.constant 0 : i32
    return %c0_i32, %c0_i32_0 : i32, i32
  }
  func.func @transform_4(%arg0: i32) -> (i32, i32) {
    %c0_i32 = arith.constant 0 : i32
    %c0_i32_0 = arith.constant 0 : i32
    %c0_i32_1 = arith.constant 0 : i32
    return %c0_i32, %c0_i32_0 : i32, i32
  }
  func.func @transform_5(%arg0: i32) -> (i32, i32) {
    %c0_i32 = arith.constant 0 : i32
    %c0_i32_0 = arith.constant 0 : i32
    return %arg0, %c0_i32 : i32, i32
  }
}

</mosaic_0001>

<bundles_post_ra>
// kernel: tpu_custom_call.1
= control target key start
LH: loop header
LB: loop body
LE: loop exit
PB: predicated region body
PF: predicated region fallthrough
CT: control target
= control target key end

     0   :  { %v931_v0 = vmov 0.0   ;;  %vm932_vm0 = vmmov 0   ;;  %vm56_vm1 = vcmask 261120   ;;  %vm623_vm2 = vcmask 785408   ;;  %s1380_s1 = inlined_call_operand.vmem [shape: f32[32,32], index: 1, kind: input, shape index: {}]   ;;  %s1381_s0 = inlined_call_operand.vmem [shape: f32[200,32], index: 0, kind: input, shape index: {}]   ;;  %s1382_s3 = inlined_call_operand.vmem [shape: f32[32,96], index: 3, kind: input, shape index: {}]   ;;  %s1383_s2 = inlined_call_operand.vmem [shape: f32[1,32], index: 2, kind: input, shape index: {}]   ;;  %s1384_s4 = inlined_call_operand.vmem [shape: f32[1,96], index: 4, kind: input, shape index: {}]   ;;  %s1385_s5 = inlined_call_operand.vmem [shape: f32[200,96], index: 5, kind: output, shape index: {}]  }
   0x1   :  { %763 = vmatprep.subr.mxu0 %v931_v0  ;;  %v48_v1 = vld [vmem:[%s1380_s1 + $0x18] sm:$0xff]  ;;  %v47_v2 = vld [vmem:[%s1380_s1 + $0x10] sm:$0xff]  ;;  %771 = vmatprep.mubr.msk.f32.mxu0 %vm932_vm0, %v931_v0  ;;  %v46_v3 = vld [vmem:[%s1380_s1 + $0x8] sm:$0xff] }
   0x2   :  { %764 = vmatpush3.msra.mxu0 %v48_v1  ;;  %846 = vmatprep.subr.mxu1 %v931_v0  ;;  %v45_v4 = vld [vmem:[%s1380_s1] sm:$0xff]  ;;  %v21_v6 = vld [vmem:[%s1381_s0 + $0x8] sm:$0xff]  ;;  %v350_v7 = vld [vmem:[%s1382_s3 + $0x18] sm:$0xff] }
   0x3   :  { %765 = vmatprep.subr.mxu0 %v931_v0  ;;  %854 = vmatprep.mubr.msk.f32.mxu1 %vm932_vm0, %v931_v0  ;;  %v20_v5 = vld [vmem:[%s1381_s0] sm:$0xff]  ;;  %v22_v8 = vld [vmem:[%s1381_s0 + $0x10] sm:$0xff]  ;;  %v23_v9 = vld [vmem:[%s1381_s0 + $0x18] sm:$0xff] }
   0x4   :  { %766 = vmatpush3.msra.mxu0 %v47_v2  ;;  %847 = vmatpush3.msra.mxu1 %v350_v7  ;;  %v24_v10 = vld [vmem:[%s1381_s0 + $0x20] sm:$0xff]  ;;  %v25_v11 = vld [vmem:[%s1381_s0 + $0x28] sm:$0xff]  ;;  %v26_v12 = vld [vmem:[%s1381_s0 + $0x30] sm:$0xff] }
   0x5   :  { %767 = vmatprep.subr.mxu0 %v931_v0  ;;  %848 = vmatprep.subr.mxu1 %v931_v0  ;;  %v27_v13 = vld [vmem:[%s1381_s0 + $0x38] sm:$0xff]  ;;  %v28_v14 = vld [vmem:[%s1381_s0 + $0x40] sm:$0xff]  ;;  %v29_v15 = vld [vmem:[%s1381_s0 + $0x48] sm:$0xff] }
   0x6   :  { %768 = vmatpush3.msra.mxu0 %v46_v3  ;;  %v30_v16 = vld [vmem:[%s1381_s0 + $0x50] sm:$0xff]  ;;  %v31_v17 = vld [vmem:[%s1381_s0 + $0x58] sm:$0xff]  ;;  %v32_v18 = vld [vmem:[%s1381_s0 + $0x60] sm:$0xff] }
   0x7   :  { %769 = vmatprep.subr.mxu0 %v931_v0  ;;  %v33_v19 = vld [vmem:[%s1381_s0 + $0x68] sm:$0xff]  ;;  %v34_v20 = vld [vmem:[%s1381_s0 + $0x70] sm:$0xff]  ;;  %v35_v21 = vld [vmem:[%s1381_s0 + $0x78] sm:$0xff] }
   0x8   :  { %770 = vmatpush3.msra.mxu0 %v45_v4  ;;  %v36_v22 = vld [vmem:[%s1381_s0 + $0x80] sm:$0xff]  ;;  %v349_v23 = vld [vmem:[%s1382_s3 + $0x10] sm:$0xff]  ;;  %v37_v24 = vld [vmem:[%s1381_s0 + $0x88] sm:$0xff] }
   0x9   :  { %772 = vmatmul.mubr.msk.f32.vlgmr.msra.gmra.mxu0 %vm56_vm1, %v20_v5  ;;  %849 = vmatpush3.msra.mxu1 %v349_v23  ;;  %v348_v25 = vld [vmem:[%s1382_s3 + $0x8] sm:$0xff]  ;;  %v347_v26 = vld [vmem:[%s1382_s3] sm:$0xff]  ;;  %v38_v27 = vld [vmem:[%s1381_s0 + $0x90] sm:$0xff] }
   0xa   :  { %774 = vmatprep.mubr.msk.f32.mxu0 %vm932_vm0, %v931_v0  ;;  %850 = vmatprep.subr.mxu1 %v931_v0  ;;  %v39_v28 = vld [vmem:[%s1381_s0 + $0x98] sm:$0xff]  ;;  %v40_v29 = vld [vmem:[%s1381_s0 + $0xa0] sm:$0xff]  ;;  %v41_v30 = vld [vmem:[%s1381_s0 + $0xa8] sm:$0xff] }
   0xb   :  { %851 = vmatpush3.msra.mxu1 %v348_v25  ;;  %v42_v31 = vld [vmem:[%s1381_s0 + $0xb0] sm:$0xff]  ;;  %v43_v32 = vld [vmem:[%s1381_s0 + $0xb8] sm:$0xff]  ;;  %v44_v33 = vld [vmem:[%s1381_s0 + $0xc0] sm:$0xff] }
   0xc   :  { %852 = vmatprep.subr.mxu1 %v931_v0  ;;  %v1150_v34 = vld [vmem:[%s1383_s2] ss:$0 sm:$0xff] }
   0xd   :  { %775 = vmatmul.mubr.msk.f32.gmra.mxu0 %vm56_vm1, %v21_v6  ;;  %853 = vmatpush3.msra.mxu1 %v347_v26 }
   0xe   :  { %777 = vmatprep.mubr.msk.f32.mxu0 %vm932_vm0, %v931_v0 }
  0x11   :  { %778 = vmatmul.mubr.msk.f32.gmra.mxu0 %vm56_vm1, %v22_v8 }
  0x12   :  { %780 = vmatprep.mubr.msk.f32.mxu0 %vm932_vm0, %v931_v0 }
  0x15   :  { %781 = vmatmul.mubr.msk.f32.gmra.mxu0 %vm56_vm1, %v23_v9 }
  0x16   :  { %783 = vmatprep.mubr.msk.f32.mxu0 %vm932_vm0, %v931_v0 }
  0x19   :  { %784 = vmatmul.mubr.msk.f32.gmra.mxu0 %vm56_vm1, %v24_v10 }
  0x1a   :  { %786 = vmatprep.mubr.msk.f32.mxu0 %vm932_vm0, %v931_v0 }
  0x1d   :  { %787 = vmatmul.mubr.msk.f32.gmra.mxu0 %vm56_vm1, %v25_v11 }
  0x1e   :  { %789 = vmatprep.mubr.msk.f32.mxu0 %vm932_vm0, %v931_v0 }
  0x21   :  { %790 = vmatmul.mubr.msk.f32.gmra.mxu0 %vm56_vm1, %v26_v12 }
  0x22   :  { %792 = vmatprep.mubr.msk.f32.mxu0 %vm932_vm0, %v931_v0 }
  0x25   :  { %793 = vmatmul.mubr.msk.f32.gmra.mxu0 %vm56_vm1, %v27_v13 }
  0x26   :  { %795 = vmatprep.mubr.msk.f32.mxu0 %vm932_vm0, %v931_v0 }
  0x29   :  { %796 = vmatmul.mubr.msk.f32.gmra.mxu0 %vm56_vm1, %v28_v14 }
  0x2a   :  { %798 = vmatprep.mubr.msk.f32.mxu0 %vm932_vm0, %v931_v0 }
  0x2d   :  { %799 = vmatmul.mubr.msk.f32.gmra.mxu0 %vm56_vm1, %v29_v15 }
  0x2e   :  { %801 = vmatprep.mubr.msk.f32.mxu0 %vm932_vm0, %v931_v0 }
  0x31   :  { %802 = vmatmul.mubr.msk.f32.gmra.mxu0 %vm56_vm1, %v30_v16 }
  0x32   :  { %804 = vmatprep.mubr.msk.f32.mxu0 %vm932_vm0, %v931_v0 }
  0x35   :  { %805 = vmatmul.mubr.msk.f32.gmra.mxu0 %vm56_vm1, %v31_v17 }
  0x36   :  { %807 = vmatprep.mubr.msk.f32.mxu0 %vm932_vm0, %v931_v0 }
  0x39   :  { %808 = vmatmul.mubr.msk.f32.gmra.mxu0 %vm56_vm1, %v32_v18 }
  0x3a   :  { %810 = vmatprep.mubr.msk.f32.mxu0 %vm932_vm0, %v931_v0 }
  0x3d   :  { %811 = vmatmul.mubr.msk.f32.gmra.mxu0 %vm56_vm1, %v33_v19 }
  0x3e   :  { %813 = vmatprep.mubr.msk.f32.mxu0 %vm932_vm0, %v931_v0 }
  0x41   :  { %814 = vmatmul.mubr.msk.f32.gmra.mxu0 %vm56_vm1, %v34_v20 }
  0x42   :  { %816 = vmatprep.mubr.msk.f32.mxu0 %vm932_vm0, %v931_v0 }
  0x45   :  { %817 = vmatmul.mubr.msk.f32.gmra.mxu0 %vm56_vm1, %v35_v21 }
  0x46   :  { %819 = vmatprep.mubr.msk.f32.mxu0 %vm932_vm0, %v931_v0 }
  0x49   :  { %820 = vmatmul.mubr.msk.f32.gmra.mxu0 %vm56_vm1, %v36_v22 }
  0x4a   :  { %822 = vmatprep.mubr.msk.f32.mxu0 %vm932_vm0, %v931_v0 }
  0x4d   :  { %823 = vmatmul.mubr.msk.f32.gmra.mxu0 %vm56_vm1, %v37_v24 }
  0x4e   :  { %825 = vmatprep.mubr.msk.f32.mxu0 %vm932_vm0, %v931_v0 }
  0x51   :  { %826 = vmatmul.mubr.msk.f32.gmra.mxu0 %vm56_vm1, %v38_v27 }
  0x52   :  { %828 = vmatprep.mubr.msk.f32.mxu0 %vm932_vm0, %v931_v0 }
  0x55   :  { %829 = vmatmul.mubr.msk.f32.gmra.mxu0 %vm56_vm1, %v39_v28 }
  0x56   :  { %831 = vmatprep.mubr.msk.f32.mxu0 %vm932_vm0, %v931_v0 }
  0x59   :  { %832 = vmatmul.mubr.msk.f32.gmra.mxu0 %vm56_vm1, %v40_v29 }
  0x5a   :  { %834 = vmatprep.mubr.msk.f32.mxu0 %vm932_vm0, %v931_v0 }
  0x5d   :  { %835 = vmatmul.mubr.msk.f32.gmra.mxu0 %vm56_vm1, %v41_v30 }
  0x5e   :  { %837 = vmatprep.mubr.msk.f32.mxu0 %vm932_vm0, %v931_v0 }
  0x61   :  { %838 = vmatmul.mubr.msk.f32.gmra.mxu0 %vm56_vm1, %v42_v31 }
  0x62   :  { %840 = vmatprep.mubr.msk.f32.mxu0 %vm932_vm0, %v931_v0 }
  0x65   :  { %841 = vmatmul.mubr.msk.f32.gmra.mxu0 %vm56_vm1, %v43_v32 }
  0x66   :  { %843 = vmatprep.mubr.msk.f32.mxu0 %vm932_vm0, %v931_v0 }
  0x69   :  { %844 = vmatmul.mubr.msk.f32.gmra.mxu0 %vm56_vm1, %v44_v33 }
  0xc9   :  { %v198_v35 = vpop.f32.mrf.mxu0 }
  0xca   :  { %v199_v36 = vadd.f32 %v1150_v34, %v198_v35 }
  0xcb   :  { %v773_v37 = vpop.f32.mrf.mxu0 }
  0xcc   :  { %v322_v38 = vmax.f32 %v199_v36, 0.0 }
  0xcd   :  { %v203_v39 = vpop.f32.mrf.mxu0 }
  0xce   :  { %v204_v40 = vadd.f32 %v1150_v34, %v203_v39  ;;  %855 = vmatmul.mubr.msk.f32.vlgmr.msra.gmra.mxu1 %vm56_vm1, %v322_v38 }
  0xcf   :  { %v776_v41 = vpop.f32.mrf.mxu0  ;;  %857 = vmatprep.mubr.msk.f32.mxu1 %vm932_vm0, %v931_v0 }
  0xd0   :  { %v323_v42 = vmax.f32 %v204_v40, 0.0 }
  0xd1   :  { %v208_v43 = vpop.f32.mrf.mxu0 }
  0xd2   :  { %v209_v44 = vadd.f32 %v1150_v34, %v208_v43  ;;  %858 = vmatmul.mubr.msk.f32.gmra.mxu1 %vm56_vm1, %v323_v42 }
  0xd3   :  { %v779_v45 = vpop.f32.mrf.mxu0  ;;  %860 = vmatprep.mubr.msk.f32.mxu1 %vm932_vm0, %v931_v0 }
  0xd4   :  { %v324_v46 = vmax.f32 %v209_v44, 0.0 }
  0xd5   :  { %v213_v47 = vpop.f32.mrf.mxu0 }
  0xd6   :  { %v214_v48 = vadd.f32 %v1150_v34, %v213_v47  ;;  %861 = vmatmul.mubr.msk.f32.gmra.mxu1 %vm56_vm1, %v324_v46 }
  0xd7   :  { %v782_v49 = vpop.f32.mrf.mxu0  ;;  %863 = vmatprep.mubr.msk.f32.mxu1 %vm932_vm0, %v931_v0 }
  0xd8   :  { %v325_v50 = vmax.f32 %v214_v48, 0.0 }
  0xd9   :  { %v218_v51 = vpop.f32.mrf.mxu0 }
  0xda   :  { %v219_v52 = vadd.f32 %v1150_v34, %v218_v51  ;;  %864 = vmatmul.mubr.msk.f32.gmra.mxu1 %vm56_vm1, %v325_v50 }
  0xdb   :  { %v785_v53 = vpop.f32.mrf.mxu0  ;;  %866 = vmatprep.mubr.msk.f32.mxu1 %vm932_vm0, %v931_v0 }
  0xdc   :  { %v326_v54 = vmax.f32 %v219_v52, 0.0 }
  0xdd   :  { %v223_v55 = vpop.f32.mrf.mxu0 }
  0xde   :  { %v224_v56 = vadd.f32 %v1150_v34, %v223_v55  ;;  %867 = vmatmul.mubr.msk.f32.gmra.mxu1 %vm56_vm1, %v326_v54 }
  0xdf   :  { %v788_v57 = vpop.f32.mrf.mxu0  ;;  %869 = vmatprep.mubr.msk.f32.mxu1 %vm932_vm0, %v931_v0 }
  0xe0   :  { %v327_v58 = vmax.f32 %v224_v56, 0.0 }
  0xe1   :  { %v228_v59 = vpop.f32.mrf.mxu0 }
  0xe2   :  { %v229_v60 = vadd.f32 %v1150_v34, %v228_v59  ;;  %870 = vmatmul.mubr.msk.f32.gmra.mxu1 %vm56_vm1, %v327_v58 }
  0xe3   :  { %v791_v61 = vpop.f32.mrf.mxu0  ;;  %872 = vmatprep.mubr.msk.f32.mxu1 %vm932_vm0, %v931_v0 }
  0xe4   :  { %v328_v62 = vmax.f32 %v229_v60, 0.0 }
  0xe5   :  { %v233_v63 = vpop.f32.mrf.mxu0 }
  0xe6   :  { %v234_v1 = vadd.f32 %v1150_v34, %v233_v63  ;;  %873 = vmatmul.mubr.msk.f32.gmra.mxu1 %vm56_vm1, %v328_v62 }
  0xe7   :  { %v794_v2 = vpop.f32.mrf.mxu0  ;;  %875 = vmatprep.mubr.msk.f32.mxu1 %vm932_vm0, %v931_v0 }
  0xe8   :  { %v329_v3 = vmax.f32 %v234_v1, 0.0 }
  0xe9   :  { %v238_v4 = vpop.f32.mrf.mxu0 }
  0xea   :  { %v239_v5 = vadd.f32 %v1150_v34, %v238_v4  ;;  %876 = vmatmul.mubr.msk.f32.gmra.mxu1 %vm56_vm1, %v329_v3 }
  0xeb   :  { %v797_v6 = vpop.f32.mrf.mxu0  ;;  %878 = vmatprep.mubr.msk.f32.mxu1 %vm932_vm0, %v931_v0 }
  0xec   :  { %v330_v7 = vmax.f32 %v239_v5, 0.0 }
  0xed   :  { %v243_v8 = vpop.f32.mrf.mxu0 }
  0xee   :  { %v244_v9 = vadd.f32 %v1150_v34, %v243_v8  ;;  %879 = vmatmul.mubr.msk.f32.gmra.mxu1 %vm56_vm1, %v330_v7 }
  0xef   :  { %v800_v10 = vpop.f32.mrf.mxu0  ;;  %881 = vmatprep.mubr.msk.f32.mxu1 %vm932_vm0, %v931_v0 }
  0xf0   :  { %v331_v11 = vmax.f32 %v244_v9, 0.0  ;;  %v1253_v10 = vld [vmem:[%s1384_s4] ss:$0 sm:$0xff] }
  0xf1   :  { %v248_v12 = vpop.f32.mrf.mxu0 }
  0xf2   :  { %v249_v13 = vadd.f32 %v1150_v34, %v248_v12  ;;  %882 = vmatmul.mubr.msk.f32.gmra.mxu1 %vm56_vm1, %v331_v11 }
  0xf3   :  { %v803_v14 = vpop.f32.mrf.mxu0  ;;  %884 = vmatprep.mubr.msk.f32.mxu1 %vm932_vm0, %v931_v0 }
  0xf4   :  { %v332_v15 = vmax.f32 %v249_v13, 0.0 }
  0xf5   :  { %v253_v16 = vpop.f32.mrf.mxu0 }
  0xf6   :  { %v254_v17 = vadd.f32 %v1150_v34, %v253_v16  ;;  %885 = vmatmul.mubr.msk.f32.gmra.mxu1 %vm56_vm1, %v332_v15 }
  0xf7   :  { %v806_v18 = vpop.f32.mrf.mxu0  ;;  %887 = vmatprep.mubr.msk.f32.mxu1 %vm932_vm0, %v931_v0 }
  0xf8   :  { %v333_v19 = vmax.f32 %v254_v17, 0.0 }
  0xf9   :  { %v258_v20 = vpop.f32.mrf.mxu0 }
  0xfa   :  { %v259_v21 = vadd.f32 %v1150_v34, %v258_v20  ;;  %888 = vmatmul.mubr.msk.f32.gmra.mxu1 %vm56_vm1, %v333_v19 }
  0xfb   :  { %v809_v22 = vpop.f32.mrf.mxu0  ;;  %890 = vmatprep.mubr.msk.f32.mxu1 %vm932_vm0, %v931_v0 }
  0xfc   :  { %v334_v23 = vmax.f32 %v259_v21, 0.0 }
  0xfd   :  { %v263_v24 = vpop.f32.mrf.mxu0 }
  0xfe   :  { %v264_v25 = vadd.f32 %v1150_v34, %v263_v24  ;;  %891 = vmatmul.mubr.msk.f32.gmra.mxu1 %vm56_vm1, %v334_v23 }
  0xff   :  { %v812_v26 = vpop.f32.mrf.mxu0  ;;  %893 = vmatprep.mubr.msk.f32.mxu1 %vm932_vm0, %v931_v0 }
 0x100   :  { %v335_v27 = vmax.f32 %v264_v25, 0.0 }
 0x101   :  { %v268_v28 = vpop.f32.mrf.mxu0 }
 0x102   :  { %v269_v29 = vadd.f32 %v1150_v34, %v268_v28  ;;  %894 = vmatmul.mubr.msk.f32.gmra.mxu1 %vm56_vm1, %v335_v27 }
 0x103   :  { %v815_v30 = vpop.f32.mrf.mxu0  ;;  %896 = vmatprep.mubr.msk.f32.mxu1 %vm932_vm0, %v931_v0 }
 0x104   :  { %v336_v31 = vmax.f32 %v269_v29, 0.0 }
 0x105   :  { %v273_v32 = vpop.f32.mrf.mxu0 }
 0x106   :  { %v274_v33 = vadd.f32 %v1150_v34, %v273_v32  ;;  %897 = vmatmul.mubr.msk.f32.gmra.mxu1 %vm56_vm1, %v336_v31 }
 0x107   :  { %v818_v35 = vpop.f32.mrf.mxu0  ;;  %899 = vmatprep.mubr.msk.f32.mxu1 %vm932_vm0, %v931_v0 }
 0x108   :  { %v337_v36 = vmax.f32 %v274_v33, 0.0 }
 0x109   :  { %v278_v37 = vpop.f32.mrf.mxu0 }
 0x10a   :  { %v279_v38 = vadd.f32 %v1150_v34, %v278_v37  ;;  %900 = vmatmul.mubr.msk.f32.gmra.mxu1 %vm56_vm1, %v337_v36 }
 0x10b   :  { %v821_v39 = vpop.f32.mrf.mxu0  ;;  %902 = vmatprep.mubr.msk.f32.mxu1 %vm932_vm0, %v931_v0 }
 0x10c   :  { %v338_v40 = vmax.f32 %v279_v38, 0.0 }
 0x10d   :  { %v283_v41 = vpop.f32.mrf.mxu0 }
 0x10e   :  { %v284_v42 = vadd.f32 %v1150_v34, %v283_v41  ;;  %903 = vmatmul.mubr.msk.f32.gmra.mxu1 %vm56_vm1, %v338_v40 }
 0x10f   :  { %v824_v43 = vpop.f32.mrf.mxu0  ;;  %905 = vmatprep.mubr.msk.f32.mxu1 %vm932_vm0, %v931_v0 }
 0x110   :  { %v339_v44 = vmax.f32 %v284_v42, 0.0 }
 0x111   :  { %v288_v45 = vpop.f32.mrf.mxu0 }
 0x112   :  { %v289_v46 = vadd.f32 %v1150_v34, %v288_v45  ;;  %906 = vmatmul.mubr.msk.f32.gmra.mxu1 %vm56_vm1, %v339_v44 }
 0x113   :  { %v827_v47 = vpop.f32.mrf.mxu0  ;;  %908 = vmatprep.mubr.msk.f32.mxu1 %vm932_vm0, %v931_v0 }
 0x114   :  { %v340_v48 = vmax.f32 %v289_v46, 0.0 }
 0x115   :  { %v293_v49 = vpop.f32.mrf.mxu0 }
 0x116   :  { %v294_v50 = vadd.f32 %v1150_v34, %v293_v49  ;;  %909 = vmatmul.mubr.msk.f32.gmra.mxu1 %vm56_vm1, %v340_v48 }
 0x117   :  { %v830_v51 = vpop.f32.mrf.mxu0  ;;  %911 = vmatprep.mubr.msk.f32.mxu1 %vm932_vm0, %v931_v0 }
 0x118   :  { %v341_v52 = vmax.f32 %v294_v50, 0.0 }
 0x119   :  { %v298_v53 = vpop.f32.mrf.mxu0 }
 0x11a   :  { %v299_v54 = vadd.f32 %v1150_v34, %v298_v53  ;;  %912 = vmatmul.mubr.msk.f32.gmra.mxu1 %vm56_vm1, %v341_v52 }
 0x11b   :  { %v833_v55 = vpop.f32.mrf.mxu0  ;;  %914 = vmatprep.mubr.msk.f32.mxu1 %vm932_vm0, %v931_v0 }
 0x11c   :  { %v342_v56 = vmax.f32 %v299_v54, 0.0 }
 0x11d   :  { %v303_v57 = vpop.f32.mrf.mxu0 }
 0x11e   :  { %v304_v58 = vadd.f32 %v1150_v34, %v303_v57  ;;  %915 = vmatmul.mubr.msk.f32.gmra.mxu1 %vm56_vm1, %v342_v56 }
 0x11f   :  { %v836_v59 = vpop.f32.mrf.mxu0  ;;  %917 = vmatprep.mubr.msk.f32.mxu1 %vm932_vm0, %v931_v0 }
 0x120   :  { %v343_v60 = vmax.f32 %v304_v58, 0.0 }
 0x121   :  { %v308_v61 = vpop.f32.mrf.mxu0 }
 0x122   :  { %v309_v62 = vadd.f32 %v1150_v34, %v308_v61  ;;  %918 = vmatmul.mubr.msk.f32.gmra.mxu1 %vm56_vm1, %v343_v60 }
 0x123   :  { %v839_v63 = vpop.f32.mrf.mxu0  ;;  %920 = vmatprep.mubr.msk.f32.mxu1 %vm932_vm0, %v931_v0 }
 0x124   :  { %v344_v1 = vmax.f32 %v309_v62, 0.0 }
 0x125   :  { %v313_v2 = vpop.f32.mrf.mxu0 }
 0x126   :  { %v314_v3 = vadd.f32 %v1150_v34, %v313_v2  ;;  %921 = vmatmul.mubr.msk.f32.gmra.mxu1 %vm56_vm1, %v344_v1 }
 0x127   :  { %v842_v4 = vpop.f32.mrf.mxu0  ;;  %923 = vmatprep.mubr.msk.f32.mxu1 %vm932_vm0, %v931_v0 }
 0x128   :  { %v345_v5 = vmax.f32 %v314_v3, 0.0 }
 0x129   :  { %v318_v6 = vpop.f32.mrf.mxu0 }
 0x12a   :  { %v319_v7 = vadd.f32 %v1150_v34, %v318_v6  ;;  %924 = vmatmul.mubr.msk.f32.gmra.mxu1 %vm56_vm1, %v345_v5 }
 0x12b   :  { %v845_v8 = vpop.f32.mrf.mxu0  ;;  %926 = vmatprep.mubr.msk.f32.mxu1 %vm932_vm0, %v931_v0 }
 0x12c   :  { %v346_v9 = vmax.f32 %v319_v7, 0.0 }
 0x12e   :  { %927 = vmatmul.mubr.msk.f32.gmra.mxu1 %vm56_vm1, %v346_v9 }
 0x18e   :  { %v499_v11 = vpop.f32.mrf.mxu1 }
 0x18f   :  { %v500_v12 = vadd.f32 %v1253_v10, %v499_v11 }
 0x190   :  { %v856_v13 = vpop.f32.mrf.mxu1 }
 0x191   :  { %624 = vst.msk [vmem:[%s1385_s5] sm:$0xff] %vm623_vm2, %v500_v12 }
 0x192   :  { %v504_v34 = vpop.f32.mrf.mxu1 }
 0x193   :  { %v505_v0 = vadd.f32 %v1253_v10, %v504_v34 }
 0x194   :  { %v859_v14 = vpop.f32.mrf.mxu1 }
 0x195   :  { %625 = vst.msk [vmem:[%s1385_s5 + $0x8] sm:$0xff] %vm623_vm2, %v505_v0 }
 0x196   :  { %v509_v15 = vpop.f32.mrf.mxu1 }
 0x197   :  { %v510_v16 = vadd.f32 %v1253_v10, %v509_v15 }
 0x198   :  { %v862_v17 = vpop.f32.mrf.mxu1 }
 0x199   :  { %626 = vst.msk [vmem:[%s1385_s5 + $0x10] sm:$0xff] %vm623_vm2, %v510_v16 }
 0x19a   :  { %v514_v18 = vpop.f32.mrf.mxu1 }
 0x19b   :  { %v515_v19 = vadd.f32 %v1253_v10, %v514_v18 }
 0x19c   :  { %v865_v20 = vpop.f32.mrf.mxu1 }
 0x19d   :  { %627 = vst.msk [vmem:[%s1385_s5 + $0x18] sm:$0xff] %vm623_vm2, %v515_v19 }
 0x19e   :  { %v519_v21 = vpop.f32.mrf.mxu1 }
 0x19f   :  { %v520_v22 = vadd.f32 %v1253_v10, %v519_v21 }
 0x1a0   :  { %v868_v23 = vpop.f32.mrf.mxu1 }
 0x1a1   :  { %628 = vst.msk [vmem:[%s1385_s5 + $0x20] sm:$0xff] %vm623_vm2, %v520_v22 }
 0x1a2   :  { %v524_v24 = vpop.f32.mrf.mxu1 }
 0x1a3   :  { %v525_v25 = vadd.f32 %v1253_v10, %v524_v24 }
 0x1a4   :  { %v871_v26 = vpop.f32.mrf.mxu1 }
 0x1a5   :  { %629 = vst.msk [vmem:[%s1385_s5 + $0x28] sm:$0xff] %vm623_vm2, %v525_v25 }
 0x1a6   :  { %v529_v27 = vpop.f32.mrf.mxu1 }
 0x1a7   :  { %v530_v28 = vadd.f32 %v1253_v10, %v529_v27 }
 0x1a8   :  { %v874_v29 = vpop.f32.mrf.mxu1 }
 0x1a9   :  { %630 = vst.msk [vmem:[%s1385_s5 + $0x30] sm:$0xff] %vm623_vm2, %v530_v28 }
 0x1aa   :  { %v534_v30 = vpop.f32.mrf.mxu1 }
 0x1ab   :  { %v535_v31 = vadd.f32 %v1253_v10, %v534_v30 }
 0x1ac   :  { %v877_v32 = vpop.f32.mrf.mxu1 }
 0x1ad   :  { %631 = vst.msk [vmem:[%s1385_s5 + $0x38] sm:$0xff] %vm623_vm2, %v535_v31 }
 0x1ae   :  { %v539_v33 = vpop.f32.mrf.mxu1 }
 0x1af   :  { %v540_v35 = vadd.f32 %v1253_v10, %v539_v33 }
 0x1b0   :  { %v880_v36 = vpop.f32.mrf.mxu1 }
 0x1b1   :  { %632 = vst.msk [vmem:[%s1385_s5 + $0x40] sm:$0xff] %vm623_vm2, %v540_v35 }
 0x1b2   :  { %v544_v37 = vpop.f32.mrf.mxu1 }
 0x1b3   :  { %v545_v38 = vadd.f32 %v1253_v10, %v544_v37 }
 0x1b4   :  { %v883_v39 = vpop.f32.mrf.mxu1 }
 0x1b5   :  { %633 = vst.msk [vmem:[%s1385_s5 + $0x48] sm:$0xff] %vm623_vm2, %v545_v38 }
 0x1b6   :  { %v549_v40 = vpop.f32.mrf.mxu1 }
 0x1b7   :  { %v550_v41 = vadd.f32 %v1253_v10, %v549_v40 }
 0x1b8   :  { %v886_v42 = vpop.f32.mrf.mxu1 }
 0x1b9   :  { %634 = vst.msk [vmem:[%s1385_s5 + $0x50] sm:$0xff] %vm623_vm2, %v550_v41 }
 0x1ba   :  { %v554_v43 = vpop.f32.mrf.mxu1 }
 0x1bb   :  { %v555_v44 = vadd.f32 %v1253_v10, %v554_v43 }
 0x1bc   :  { %v889_v45 = vpop.f32.mrf.mxu1 }
 0x1bd   :  { %635 = vst.msk [vmem:[%s1385_s5 + $0x58] sm:$0xff] %vm623_vm2, %v555_v44 }
 0x1be   :  { %v559_v46 = vpop.f32.mrf.mxu1 }
 0x1bf   :  { %v560_v47 = vadd.f32 %v1253_v10, %v559_v46 }
 0x1c0   :  { %v892_v48 = vpop.f32.mrf.mxu1 }
 0x1c1   :  { %636 = vst.msk [vmem:[%s1385_s5 + $0x60] sm:$0xff] %vm623_vm2, %v560_v47 }
 0x1c2   :  { %v564_v49 = vpop.f32.mrf.mxu1 }
 0x1c3   :  { %v565_v50 = vadd.f32 %v1253_v10, %v564_v49 }
 0x1c4   :  { %v895_v51 = vpop.f32.mrf.mxu1 }
 0x1c5   :  { %637 = vst.msk [vmem:[%s1385_s5 + $0x68] sm:$0xff] %vm623_vm2, %v565_v50 }
 0x1c6   :  { %v569_v52 = vpop.f32.mrf.mxu1 }
 0x1c7   :  { %v570_v53 = vadd.f32 %v1253_v10, %v569_v52 }
 0x1c8   :  { %v898_v54 = vpop.f32.mrf.mxu1 }
 0x1c9   :  { %638 = vst.msk [vmem:[%s1385_s5 + $0x70] sm:$0xff] %vm623_vm2, %v570_v53 }
 0x1ca   :  { %v574_v55 = vpop.f32.mrf.mxu1 }
 0x1cb   :  { %v575_v56 = vadd.f32 %v1253_v10, %v574_v55 }
 0x1cc   :  { %v901_v57 = vpop.f32.mrf.mxu1 }
 0x1cd   :  { %639 = vst.msk [vmem:[%s1385_s5 + $0x78] sm:$0xff] %vm623_vm2, %v575_v56 }
 0x1ce   :  { %v579_v58 = vpop.f32.mrf.mxu1 }
 0x1cf   :  { %v580_v59 = vadd.f32 %v1253_v10, %v579_v58 }
 0x1d0   :  { %v904_v60 = vpop.f32.mrf.mxu1 }
 0x1d1   :  { %640 = vst.msk [vmem:[%s1385_s5 + $0x80] sm:$0xff] %vm623_vm2, %v580_v59 }
 0x1d2   :  { %v584_v61 = vpop.f32.mrf.mxu1 }
 0x1d3   :  { %v585_v62 = vadd.f32 %v1253_v10, %v584_v61 }
 0x1d4   :  { %v907_v63 = vpop.f32.mrf.mxu1 }
 0x1d5   :  { %641 = vst.msk [vmem:[%s1385_s5 + $0x88] sm:$0xff] %vm623_vm2, %v585_v62 }
 0x1d6   :  { %v589_v1 = vpop.f32.mrf.mxu1 }
 0x1d7   :  { %v590_v2 = vadd.f32 %v1253_v10, %v589_v1 }
 0x1d8   :  { %v910_v3 = vpop.f32.mrf.mxu1 }
 0x1d9   :  { %642 = vst.msk [vmem:[%s1385_s5 + $0x90] sm:$0xff] %vm623_vm2, %v590_v2 }
 0x1da   :  { %v594_v4 = vpop.f32.mrf.mxu1 }
 0x1db   :  { %v595_v5 = vadd.f32 %v1253_v10, %v594_v4 }
 0x1dc   :  { %v913_v6 = vpop.f32.mrf.mxu1 }
 0x1dd   :  { %643 = vst.msk [vmem:[%s1385_s5 + $0x98] sm:$0xff] %vm623_vm2, %v595_v5 }
 0x1de   :  { %v599_v7 = vpop.f32.mrf.mxu1 }
 0x1df   :  { %v600_v8 = vadd.f32 %v1253_v10, %v599_v7 }
 0x1e0   :  { %v916_v9 = vpop.f32.mrf.mxu1 }
 0x1e1   :  { %644 = vst.msk [vmem:[%s1385_s5 + $0xa0] sm:$0xff] %vm623_vm2, %v600_v8 }
 0x1e2   :  { %v604_v11 = vpop.f32.mrf.mxu1 }
 0x1e3   :  { %v605_v12 = vadd.f32 %v1253_v10, %v604_v11 }
 0x1e4   :  { %v919_v13 = vpop.f32.mrf.mxu1 }
 0x1e5   :  { %645 = vst.msk [vmem:[%s1385_s5 + $0xa8] sm:$0xff] %vm623_vm2, %v605_v12 }
 0x1e6   :  { %v609_v34 = vpop.f32.mrf.mxu1 }
 0x1e7   :  { %v610_v0 = vadd.f32 %v1253_v10, %v609_v34 }
 0x1e8   :  { %v922_v14 = vpop.f32.mrf.mxu1 }
 0x1e9   :  { %646 = vst.msk [vmem:[%s1385_s5 + $0xb0] sm:$0xff] %vm623_vm2, %v610_v0 }
 0x1ea   :  { %v614_v15 = vpop.f32.mrf.mxu1 }
 0x1eb   :  { %v615_v16 = vadd.f32 %v1253_v10, %v614_v15 }
 0x1ec   :  { %v925_v17 = vpop.f32.mrf.mxu1 }
 0x1ed   :  { %647 = vst.msk [vmem:[%s1385_s5 + $0xb8] sm:$0xff] %vm623_vm2, %v615_v16 }
 0x1ee   :  { %v619_v18 = vpop.f32.mrf.mxu1 }
 0x1ef   :  { %v620_v19 = vadd.f32 %v1253_v10, %v619_v18 }
 0x1f0   :  { %v928_v20 = vpop.f32.mrf.mxu1 }
 0x1f1   :  { %648 = vst.msk [vmem:[%s1385_s5 + $0xc0] sm:$0xff] %vm623_vm2, %v620_v19 }

</bundles_post_ra>
